<compile_context>
chip_gen: v7x
topology: tpu7x:2x2x1
jax: 0.10.0
libtpu: 0.0.40
codegen_flags: <defaults>
</compile_context>

<pallas_src>
import jax
import jax.numpy as jnp
from jax import lax
from jax.experimental import pallas as pl
from jax.experimental.pallas import tpu as pltpu


def _mlp_kernel(x_ref,
                w1_ref, b1_ref,
                w2_ref, b2_ref,
                w3_ref, b3_ref,
                w4_ref, b4_ref,
                w5_ref, b5_ref,
                o_ref):
    """One batch tile: x block is (tile, 18) natural layout, output block is (1, tile)."""
    x = x_ref[...]                                                    # (tile, 18) f32

    # Layer 1: contract the 18-dim of (32,18) and (tile,18) -> feature-major (32, tile).
    h = lax.dot_general(w1_ref[...], x,
                        dimension_numbers=(((1,), (1,)), ((), ())),
                        preferred_element_type=jnp.float32) + b1_ref[...]   # (32, T)
    h = jnp.maximum(h, 0.0)

    h = jnp.dot(w2_ref[...], h, preferred_element_type=jnp.float32) + b2_ref[...]   # (64, T)
    h = jnp.maximum(h, 0.0)

    h = jnp.dot(w3_ref[...], h, preferred_element_type=jnp.float32) + b3_ref[...]   # (32, T)
    h = jnp.maximum(h, 0.0)

    h = jnp.dot(w4_ref[...], h, preferred_element_type=jnp.float32) + b4_ref[...]   # (16, T)
    h = jnp.maximum(h, 0.0)

    # Final 16 -> 1 layer: broadcast-multiply + sublane (XLU) reduce; result is
    # already lane-dense (1, T).
    logits = jnp.sum(h * w5_ref[...], axis=0, keepdims=True) + b5_ref[...]           # (1, T)

    # EUP-friendly sigmoid: exp on the EUP slot + a single exact reciprocal.
    o_ref[...] = pl.reciprocal(1.0 + jnp.exp(-logits))


def _round_up(v, m):
    return (v + m - 1) // m * m


def trimap_generator_forward(x, params, *, tile_b=8192):
    """x: (N, 18) float32. params: PyTorch-convention (out, in) weights + (out,) biases.

    Returns (N, 1) float32, matching the PyTorch module's output.
    """
    n, in_dim = x.shape
    assert in_dim == 18

    # ---- Tile selection: lane-aligned (multiple of 128), capped by the batch.
    tile = max(128, min(_round_up(tile_b, 128), _round_up(n, 128)))
    # Guarantee >= 2 grid steps whenever the batch allows it, so v7x's two
    # TensorCores both get work on the "parallel" axis (neutral on v5e/v6e).
    if n > 128:
        tile = min(tile, _round_up(pl.cdiv(n, 2), 128))
    grid = (pl.cdiv(n, tile),)

    # No transpose, no pad: x stays in its natural (N, 18) layout; the ragged last
    # block (if any) is handled by Pallas' masked stores on the (1, n) output.
    x = x.astype(jnp.float32)

    w1, b1 = params["w1"], params["b1"].reshape(-1, 1)
    w2, b2 = params["w2"], params["b2"].reshape(-1, 1)
    w3, b3 = params["w3"], params["b3"].reshape(-1, 1)
    w4, b4 = params["w4"], params["b4"].reshape(-1, 1)
    w5, b5 = params["w5"].reshape(-1, 1), params["b5"].reshape(-1, 1)   # (16, 1), (1, 1)

    def full_spec(a):
        # Tiny parameter fully resident in VMEM; constant block index => no re-DMA per step.
        return pl.BlockSpec(a.shape, lambda i: (0, 0))

    out = pl.pallas_call(
        _mlp_kernel,
        out_shape=jax.ShapeDtypeStruct((1, n), jnp.float32),
        grid=grid,
        in_specs=[
            pl.BlockSpec((tile, 18), lambda i: (i, 0)),
            full_spec(w1), full_spec(b1),
            full_spec(w2), full_spec(b2),
            full_spec(w3), full_spec(b3),
            full_spec(w4), full_spec(b4),
            full_spec(w5), full_spec(b5),
        ],
        out_specs=pl.BlockSpec((1, tile), lambda i: (0, i)),
        compiler_params=pltpu.CompilerParams(
            dimension_semantics=("parallel",)),
    )(x, w1, b1, w2, b2, w3, b3, w4, b4, w5, b5)

    # Back to the PyTorch output shape (N, 1).
    return out.T


def init_params(key):
    """Deterministic synthetic init matching nn.Linear shapes (weight: (out, in), bias: (out,))."""
    dims = [(32, 18), (64, 32), (32, 64), (16, 32), (1, 16)]
    params = {}
    for idx, (out_d, in_d) in enumerate(dims, start=1):
        key, kw, kb = jax.random.split(key, 3)
        bound = 1.0 / jnp.sqrt(in_d)
        params[f"w{idx}"] = jax.random.uniform(
            kw, (out_d, in_d), jnp.float32, minval=-bound, maxval=bound)
        params[f"b{idx}"] = jax.random.uniform(
            kb, (out_d,), jnp.float32, minval=-bound, maxval=bound)
    return params


def reference_forward(x, params):
    """Plain-JAX reference mirroring the PyTorch module exactly."""
    h = jax.nn.relu(x @ params["w1"].T + params["b1"])
    h = jax.nn.relu(h @ params["w2"].T + params["b2"])
    h = jax.nn.relu(h @ params["w3"].T + params["b3"])
    h = jax.nn.relu(h @ params["w4"].T + params["b4"])
    return jax.nn.sigmoid(h @ params["w5"].T + params["b5"])


if __name__ == "__main__":
    key = jax.random.PRNGKey(0)
    k_params, k_x = jax.random.split(key)

    params = init_params(k_params)
    # Small, non-tile-multiple batch: exercises the ragged last block and a 2-step grid.
    x = jax.random.normal(k_x, (200, 18), dtype=jnp.float32)

    out = trimap_generator_forward(x, params)
    out = jax.block_until_ready(out)

    ref = reference_forward(x, params)
    assert out.shape == (200, 1)
    assert jnp.allclose(out, ref, atol=1e-5, rtol=1e-5), "mismatch vs reference"

    print("KERNEL_OK")
</pallas_src>

<mosaic_0001>
module attributes {stable_mosaic.version = 11 : i64} {
  func.func @_mlp_kernel(%arg0: i32, %arg1: memref<128x18xf32, #tpu.memory_space<vmem>>, %arg2: memref<32x18xf32, #tpu.memory_space<vmem>>, %arg3: memref<32x1xf32, #tpu.memory_space<vmem>>, %arg4: memref<64x32xf32, #tpu.memory_space<vmem>>, %arg5: memref<64x1xf32, #tpu.memory_space<vmem>>, %arg6: memref<32x64xf32, #tpu.memory_space<vmem>>, %arg7: memref<32x1xf32, #tpu.memory_space<vmem>>, %arg8: memref<16x32xf32, #tpu.memory_space<vmem>>, %arg9: memref<16x1xf32, #tpu.memory_space<vmem>>, %arg10: memref<16x1xf32, #tpu.memory_space<vmem>>, %arg11: memref<1x1xf32, #tpu.memory_space<vmem>>, %arg12: memref<1x128xf32, #tpu.memory_space<vmem>>) attributes {dimension_semantics = [#tpu.dimension_semantics<parallel>], iteration_bounds = array<i64: 2>, scalar_prefetch = 0 : i64, scratch_operands = 0 : i64, tpu.core_type = #tpu.core_type<tc>, window_params = [{transform_indices = @transform_0, window_bounds = array<i64: 128, 18>}, {pipeline_mode = #tpu.pipeline_mode<synchronous>, transform_indices = @transform_1, window_bounds = array<i64: 32, 18>}, {pipeline_mode = #tpu.pipeline_mode<synchronous>, transform_indices = @transform_2, window_bounds = array<i64: 32, 1>}, {pipeline_mode = #tpu.pipeline_mode<synchronous>, transform_indices = @transform_3, window_bounds = array<i64: 64, 32>}, {pipeline_mode = #tpu.pipeline_mode<synchronous>, transform_indices = @transform_4, window_bounds = array<i64: 64, 1>}, {pipeline_mode = #tpu.pipeline_mode<synchronous>, transform_indices = @transform_5, window_bounds = array<i64: 32, 64>}, {pipeline_mode = #tpu.pipeline_mode<synchronous>, transform_indices = @transform_6, window_bounds = array<i64: 32, 1>}, {pipeline_mode = #tpu.pipeline_mode<synchronous>, transform_indices = @transform_7, window_bounds = array<i64: 16, 32>}, {pipeline_mode = #tpu.pipeline_mode<synchronous>, transform_indices = @transform_8, window_bounds = array<i64: 16, 1>}, {pipeline_mode = #tpu.pipeline_mode<synchronous>, transform_indices = @transform_9, window_bounds = array<i64: 16, 1>}, {pipeline_mode = #tpu.pipeline_mode<synchronous>, transform_indices = @transform_10, window_bounds = array<i64: 1, 1>}, {transform_indices = @transform_11, window_bounds = array<i64: 1, 128>}]} {
    %c0 = arith.constant 0 : index
    %c0_0 = arith.constant 0 : index
    %0 = vector.load %arg1[%c0, %c0_0] : memref<128x18xf32, #tpu.memory_space<vmem>>, vector<128x18xf32>
    %c0_1 = arith.constant 0 : index
    %c0_2 = arith.constant 0 : index
    %1 = vector.load %arg2[%c0_1, %c0_2] : memref<32x18xf32, #tpu.memory_space<vmem>>, vector<32x18xf32>
    %cst = arith.constant dense<0.000000e+00> : vector<32x128xf32>
    %2 = tpu.matmul %1, %0, %cst {dimension_numbers = #tpu.dot_dimension_numbers<[1], [1], [0], [0], [0, 0, 1, 0], [], []>} : vector<32x18xf32>, vector<128x18xf32>, vector<32x128xf32> -> vector<32x128xf32>
    %c0_3 = arith.constant 0 : index
    %c0_4 = arith.constant 0 : index
    %3 = vector.load %arg3[%c0_3, %c0_4] : memref<32x1xf32, #tpu.memory_space<vmem>>, vector<32x1xf32>
    %4 = vector.broadcast %3 : vector<32x1xf32> to vector<32x128xf32>
    %5 = arith.addf %2, %4 : vector<32x128xf32>
    %cst_5 = arith.constant 0.000000e+00 : f32
    %6 = vector.broadcast %cst_5 : f32 to vector<32x128xf32>
    %7 = arith.maximumf %5, %6 : vector<32x128xf32>
    %c0_6 = arith.constant 0 : index
    %c0_7 = arith.constant 0 : index
    %8 = vector.load %arg4[%c0_6, %c0_7] : memref<64x32xf32, #tpu.memory_space<vmem>>, vector<64x32xf32>
    %cst_8 = arith.constant dense<0.000000e+00> : vector<64x128xf32>
    %9 = tpu.matmul %8, %7, %cst_8 {dimension_numbers = #tpu.dot_dimension_numbers<[1], [0], [0], [1], [0, 0, 1, 1], [], []>} : vector<64x32xf32>, vector<32x128xf32>, vector<64x128xf32> -> vector<64x128xf32>
    %c0_9 = arith.constant 0 : index
    %c0_10 = arith.constant 0 : index
    %10 = vector.load %arg5[%c0_9, %c0_10] : memref<64x1xf32, #tpu.memory_space<vmem>>, vector<64x1xf32>
    %11 = vector.broadcast %10 : vector<64x1xf32> to vector<64x128xf32>
    %12 = arith.addf %9, %11 : vector<64x128xf32>
    %cst_11 = arith.constant 0.000000e+00 : f32
    %13 = vector.broadcast %cst_11 : f32 to vector<64x128xf32>
    %14 = arith.maximumf %12, %13 : vector<64x128xf32>
    %c0_12 = arith.constant 0 : index
    %c0_13 = arith.constant 0 : index
    %15 = vector.load %arg6[%c0_12, %c0_13] : memref<32x64xf32, #tpu.memory_space<vmem>>, vector<32x64xf32>
    %cst_14 = arith.constant dense<0.000000e+00> : vector<32x128xf32>
    %16 = tpu.matmul %15, %14, %cst_14 {dimension_numbers = #tpu.dot_dimension_numbers<[1], [0], [0], [1], [0, 0, 1, 1], [], []>} : vector<32x64xf32>, vector<64x128xf32>, vector<32x128xf32> -> vector<32x128xf32>
    %c0_15 = arith.constant 0 : index
    %c0_16 = arith.constant 0 : index
    %17 = vector.load %arg7[%c0_15, %c0_16] : memref<32x1xf32, #tpu.memory_space<vmem>>, vector<32x1xf32>
    %18 = vector.broadcast %17 : vector<32x1xf32> to vector<32x128xf32>
    %19 = arith.addf %16, %18 : vector<32x128xf32>
    %cst_17 = arith.constant 0.000000e+00 : f32
    %20 = vector.broadcast %cst_17 : f32 to vector<32x128xf32>
    %21 = arith.maximumf %19, %20 : vector<32x128xf32>
    %c0_18 = arith.constant 0 : index
    %c0_19 = arith.constant 0 : index
    %22 = vector.load %arg8[%c0_18, %c0_19] : memref<16x32xf32, #tpu.memory_space<vmem>>, vector<16x32xf32>
    %cst_20 = arith.constant dense<0.000000e+00> : vector<16x128xf32>
    %23 = tpu.matmul %22, %21, %cst_20 {dimension_numbers = #tpu.dot_dimension_numbers<[1], [0], [0], [1], [0, 0, 1, 1], [], []>} : vector<16x32xf32>, vector<32x128xf32>, vector<16x128xf32> -> vector<16x128xf32>
    %c0_21 = arith.constant 0 : index
    %c0_22 = arith.constant 0 : index
    %24 = vector.load %arg9[%c0_21, %c0_22] : memref<16x1xf32, #tpu.memory_space<vmem>>, vector<16x1xf32>
    %25 = vector.broadcast %24 : vector<16x1xf32> to vector<16x128xf32>
    %26 = arith.addf %23, %25 : vector<16x128xf32>
    %cst_23 = arith.constant 0.000000e+00 : f32
    %27 = vector.broadcast %cst_23 : f32 to vector<16x128xf32>
    %28 = arith.maximumf %26, %27 : vector<16x128xf32>
    %c0_24 = arith.constant 0 : index
    %c0_25 = arith.constant 0 : index
    %29 = vector.load %arg10[%c0_24, %c0_25] : memref<16x1xf32, #tpu.memory_space<vmem>>, vector<16x1xf32>
    %30 = vector.broadcast %29 : vector<16x1xf32> to vector<16x128xf32>
    %31 = arith.mulf %28, %30 : vector<16x128xf32>
    %cst_26 = arith.constant dense<0.000000e+00> : vector<128xf32>
    %32 = vector.multi_reduction <add>, %31, %cst_26 [0] : vector<16x128xf32> to vector<128xf32>
    %33 = vector.shape_cast %32 : vector<128xf32> to vector<1x128xf32>
    %c0_27 = arith.constant 0 : index
    %c0_28 = arith.constant 0 : index
    %34 = vector.load %arg11[%c0_27, %c0_28] : memref<1x1xf32, #tpu.memory_space<vmem>>, vector<1x1xf32>
    %35 = vector.broadcast %34 : vector<1x1xf32> to vector<1x128xf32>
    %36 = arith.addf %33, %35 : vector<1x128xf32>
    %cst_29 = arith.constant 0.000000e+00 : f32
    %37 = vector.broadcast %cst_29 : f32 to vector<1x128xf32>
    %38 = arith.subf %37, %36 : vector<1x128xf32>
    %39 = math.exp %38 : vector<1x128xf32>
    %cst_30 = arith.constant 1.000000e+00 : f32
    %40 = vector.broadcast %cst_30 : f32 to vector<1x128xf32>
    %41 = arith.addf %40, %39 : vector<1x128xf32>
    %42 = tpu.reciprocal %41 : vector<1x128xf32> -> vector<1x128xf32>
    %c0_31 = arith.constant 0 : index
    %c0_32 = arith.constant 0 : index
    %43 = vector.load %arg12[%c0_31, %c0_32] : memref<1x128xf32, #tpu.memory_space<vmem>>, vector<1x128xf32>
    tpu.vector_store %arg12[%c0_31, %c0_32], %42 {strides = array<i32>} : memref<1x128xf32, #tpu.memory_space<vmem>>, vector<1x128xf32>,
    return
  }
  func.func @transform_0(%arg0: i32) -> (i32, i32) {
    %c0_i32 = arith.constant 0 : i32
    %c0_i32_0 = arith.constant 0 : i32
    return %arg0, %c0_i32 : i32, i32
  }
  func.func @transform_1(%arg0: i32) -> (i32, i32) {
    %c0_i32 = arith.constant 0 : i32
    %c0_i32_0 = arith.constant 0 : i32
    %c0_i32_1 = arith.constant 0 : i32
    return %c0_i32, %c0_i32_0 : i32, i32
  }
  func.func @transform_2(%arg0: i32) -> (i32, i32) {
    %c0_i32 = arith.constant 0 : i32
    %c0_i32_0 = arith.constant 0 : i32
    %c0_i32_1 = arith.constant 0 : i32
    return %c0_i32, %c0_i32_0 : i32, i32
  }
  func.func @transform_3(%arg0: i32) -> (i32, i32) {
    %c0_i32 = arith.constant 0 : i32
    %c0_i32_0 = arith.constant 0 : i32
    %c0_i32_1 = arith.constant 0 : i32
    return %c0_i32, %c0_i32_0 : i32, i32
  }
  func.func @transform_4(%arg0: i32) -> (i32, i32) {
    %c0_i32 = arith.constant 0 : i32
    %c0_i32_0 = arith.constant 0 : i32
    %c0_i32_1 = arith.constant 0 : i32
    return %c0_i32, %c0_i32_0 : i32, i32
  }
  func.func @transform_5(%arg0: i32) -> (i32, i32) {
    %c0_i32 = arith.constant 0 : i32
    %c0_i32_0 = arith.constant 0 : i32
    %c0_i32_1 = arith.constant 0 : i32
    return %c0_i32, %c0_i32_0 : i32, i32
  }
  func.func @transform_6(%arg0: i32) -> (i32, i32) {
    %c0_i32 = arith.constant 0 : i32
    %c0_i32_0 = arith.constant 0 : i32
    %c0_i32_1 = arith.constant 0 : i32
    return %c0_i32, %c0_i32_0 : i32, i32
  }
  func.func @transform_7(%arg0: i32) -> (i32, i32) {
    %c0_i32 = arith.constant 0 : i32
    %c0_i32_0 = arith.constant 0 : i32
    %c0_i32_1 = arith.constant 0 : i32
    return %c0_i32, %c0_i32_0 : i32, i32
  }
  func.func @transform_8(%arg0: i32) -> (i32, i32) {
    %c0_i32 = arith.constant 0 : i32
    %c0_i32_0 = arith.constant 0 : i32
    %c0_i32_1 = arith.constant 0 : i32
    return %c0_i32, %c0_i32_0 : i32, i32
  }
  func.func @transform_9(%arg0: i32) -> (i32, i32) {
    %c0_i32 = arith.constant 0 : i32
    %c0_i32_0 = arith.constant 0 : i32
    %c0_i32_1 = arith.constant 0 : i32
    return %c0_i32, %c0_i32_0 : i32, i32
  }
  func.func @transform_10(%arg0: i32) -> (i32, i32) {
    %c0_i32 = arith.constant 0 : i32
    %c0_i32_0 = arith.constant 0 : i32
    %c0_i32_1 = arith.constant 0 : i32
    return %c0_i32, %c0_i32_0 : i32, i32
  }
  func.func @transform_11(%arg0: i32) -> (i32, i32) {
    %c0_i32 = arith.constant 0 : i32
    %c0_i32_0 = arith.constant 0 : i32
    return %c0_i32, %arg0 : i32, i32
  }
}

</mosaic_0001>

<bundles_post_ra>
// kernel: tpu_custom_call.1
= control target key start
LH: loop header
LB: loop body
LE: loop exit
PB: predicated region body
PF: predicated region fallthrough
CT: control target
= control target key end

     0   :  { %s1855_s0 = inlined_call_operand.vmem [shape: f32[200,18], index: 0, kind: input, shape index: {}]   ;;  %s1856_s1 = inlined_call_operand.vmem [shape: f32[32,18], index: 1, kind: input, shape index: {}]   ;;  %s1857_s2 = inlined_call_operand.vmem [shape: f32[32,1], index: 2, kind: input, shape index: {}]   ;;  %s1858_s3 = inlined_call_operand.vmem [shape: f32[64,32], index: 3, kind: input, shape index: {}]   ;;  %s1859_s4 = inlined_call_operand.vmem [shape: f32[64,1], index: 4, kind: input, shape index: {}]   ;;  %s1860_s5 = inlined_call_operand.vmem [shape: f32[32,64], index: 5, kind: input, shape index: {}]   ;;  %s1861_s6 = inlined_call_operand.vmem [shape: f32[32,1], index: 6, kind: input, shape index: {}]   ;;  %s1862_s7 = inlined_call_operand.vmem [shape: f32[16,32], index: 7, kind: input, shape index: {}]   ;;  %s1863_s8 = inlined_call_operand.vmem [shape: f32[16,1], index: 8, kind: input, shape index: {}]   ;;  %s1864_s9 = inlined_call_operand.vmem [shape: f32[16,1], index: 9, kind: input, shape index: {}]   ;;  %s1865_s10 = inlined_call_operand.<no memory space> [shape: f32[1,1], index: 10, kind: input, shape index: {}]   ;;  %s1866_s11 = inlined_call_operand.hbm [shape: f32[1,200], index: 11, kind: output, shape index: {}]  }
   0x1   :  { %v16_v0 = vstv %s1865_s10 }
   0x2   :  { %17 = vst [vmem:[#allocation2] sm:$0x1] %v16_v0 }
   0x3   :  { %18 = vsyncpa [#allocation4], 0 }
   0x4   :  { %20 = vsyncpa [#allocation4 + $0x1], 0  ;;  %s1568_s19 = smov 0   ;;  %s1570_s20 = smov 0  }
   0x5   :  { %s1572_s21 = smov 0   ;;  %s1574_s22 = smov 0  }
   0x6 LB: > { %s1128_s10 = sadd.s32 4294967295, %s1501_s22   ;;  %s1129_s23 = sadd.s32 4294967294, %s1501_s22   ;;  %s1501_s22 = sphi %s1574_s22, %s1874_s22   ;;  %s1497_s21 = sphi %s1572_s21, %s1873_s21   ;;  %s1493_s20 = sphi %s1570_s20, %s1872_s20   ;;  %s1489_s19 = sphi %s1568_s19, %s1871_s19  }
   0x7   : > { %s1591_s24 = sadd.s32 1, %s1501_s22   ;;  %s269_s25 = sadd.s32 1, %s1497_s21 }
   0x8   : > { %s266_s26 = ssub.s32 %s1501_s22, %s1591_s24  ;;  %p279_p0 = scmp.ne.s32.totalorder %s1497_s21, %s1493_s20 }
   0x9   : > { %p267_p1 = scmp.eq.s32.totalorder %s266_s26, 0  ;;  %p280_p2 = scmp.eq.s32.totalorder %s1128_s10, 1 }
   0xa   : > { %p285_p3 = scmp.ne.s32.totalorder %s1493_s20, %s1489_s19  ;;  %p286_p4 = scmp.eq.s32.totalorder %s1129_s23, 1 }
   0xb   : > { %s1601_s27 = scalar_select %p267_p1, %s1497_s21, %s269_s25  }
   0xc   : > { %p1603_p5 = por %p280_p2, %p279_p0  ;;  %p1607_p6 = por %p286_p4, %p285_p3 }
   0xd   : > { %p1132_p7 = scmp.ge.s32.totalorder %s1501_s22, 1  ;;  %p351_p8 = scmp.lt.s32.totalorder %s1501_s22, 3 }
   0xf   : > { %p352_p9 = pnand %p1132_p7, %p351_p8 }
  0x10   : > { %s1613_s30 = sshll.u32 (!%p352_p9), %s1128_s10, 4  ;;  %vm452_vm0 = vcmask (!%p352_p9), 146432   ;;  %v424_v1 = vld [vmem:[%s1856_s1] sm:$0xff] (!%p352_p9)  ;;  %v1503_v2 = vmov (!%p352_p9), 0   ;;  %v430_v4 = vld [vmem:[%s1857_s2 + $0x10] sm:$0xff] (!%p352_p9)  ;;  %v429_v5 = vld [vmem:[%s1857_s2 + $0x8] sm:$0xff] (!%p352_p9) }
  0x11   : > { %355 = sbr.rel (%p352_p9) target bundleno = 1061 (0x425), region = 64  ;;  %p399_p10 = scmp.lt.s32.totalorder (!%p352_p9), %s1613_s30, 24  ;;  %1254 = vmatprep.mubr.msk.f32.mxu0 (!%p352_p9), %vm452_vm0, %v424_v1  ;;  %1433 = vset.pattern.permute.xlu0 (!%p352_p9), %v1503_v2  ;;  %v428_v3 = vld [vmem:[%s1857_s2] sm:$0xff] (!%p352_p9)  ;;  %v431_v6 = vld [vmem:[%s1857_s2 + $0x18] sm:$0xff] (!%p352_p9)  ;;  %vm1640_vm1 = vmpackc.low (!%p352_p9), %vm452_vm0, %vm452_vm0  ;;  %vm658_vm2 = vcmask (!%p352_p9), 261120   ;;  %vm824_vm3 = vcmask (!%p352_p9), 523264  }
  0x12   : > { %434 = vperm.xlu0 (!%p352_p9), %1433, %v428_v3   ;;  %1434 = vset.pattern.permute.xlu1 (!%p352_p9), %v1503_v2  ;;  %v610_v8 = vld [vmem:[%s1859_s4] sm:$0xff] (!%p352_p9)  ;;  %v611_v14 = vld [vmem:[%s1859_s4 + $0x8] sm:$0xff] (!%p352_p9)  ;;  %v612_v16 = vld [vmem:[%s1859_s4 + $0x10] sm:$0xff] (!%p352_p9)  ;;  %s392_s10 = sand.u32 (!%p352_p9), 1, %s1493_s20   ;;  %s1504_s16 = smov (!%p352_p9), [#allocation3]  }
  0x13   : > { %444 = vperm.xlu1 (!%p352_p9), %1434, %v430_v4   ;;  %v613_v17 = vld [vmem:[%s1859_s4 + $0x18] sm:$0xff] (!%p352_p9)  ;;  %v614_v20 = vld [vmem:[%s1859_s4 + $0x20] sm:$0xff] (!%p352_p9)  ;;  %v615_v22 = vld [vmem:[%s1859_s4 + $0x28] sm:$0xff] (!%p352_p9)  ;;  %s393_s23 = scalar_lea.vmem (!%p352_p9), [#allocation3], %s392_s10  ;;  %s1062_s13 = scalar_lea.sflag (!%p352_p9), [#allocation4], %s392_s10 }
  0x14   : > { %v616_v23 = vld [vmem:[%s1859_s4 + $0x30] sm:$0xff] (!%p352_p9)  ;;  %v617_v24 = vld [vmem:[%s1859_s4 + $0x38] sm:$0xff] (!%p352_p9)  ;;  %v800_v27 = vld [vmem:[%s1861_s6] sm:$0xff] (!%p352_p9)  ;;  %s1074_s25 = sshll.u32 (!%p352_p9), %s393_s23, 4  ;;  %s1443_s17 = sshll.u32 (!%p352_p9), %s1504_s16, 4  ;;  %s1815_s25 = int_to_ptr.vmem [resolvable:$true] %s1074_s25  ;;  %s1444_s17 = int_to_ptr.vmem [resolvable:$false] %s1443_s17 }
  0x15   : > { %v801_v29 = vld [vmem:[%s1861_s6 + $0x8] sm:$0xff] (!%p352_p9)  ;;  %v802_v30 = vld [vmem:[%s1861_s6 + $0x10] sm:$0xff] (!%p352_p9)  ;;  %v803_v31 = vld [vmem:[%s1861_s6 + $0x18] sm:$0xff] (!%p352_p9)  ;;  %s1439_s14 = scalar_lea.vmem (!%p352_p9), %s1815_s25, 16  ;;  %p1446_p0 = scmp.lt.s32.totalorder (!%p352_p9), %s1815_s25, %s1444_s17 }
  0x16   : > { %439 = vperm.xlu0 (!%p352_p9), %1433, %v429_v5   ;;  %v928_v34 = vld [vmem:[%s1863_s8] sm:$0xff] (!%p352_p9)  ;;  %v929_v36 = vld [vmem:[%s1863_s8 + $0x8] sm:$0xff] (!%p352_p9)  ;;  %v426_v50 = vld [vmem:[%s1856_s1 + $0x10] sm:$0xff] (!%p352_p9)  ;;  %p1440_p11 = scmp.ne.s32.totalorder (!%p352_p9), %s1815_s25, %s1439_s14 }
  0x17   : > { %449 = vperm.xlu1 (!%p352_p9), %1434, %v431_v6   ;;  %v1023_v37 = vld [vmem:[%s1864_s9] sm:$0xff] (!%p352_p9)  ;;  %v1024_v38 = vld [vmem:[%s1864_s9 + $0x8] sm:$0xff] (!%p352_p9)  ;;  %v427_v51 = vld [vmem:[%s1856_s1 + $0x18] sm:$0xff] (!%p352_p9) }
  0x18   : > { %s400_s18 = scalar_select %p399_p10, %s1613_s30, 24  ;;  %v1044_v41 = vld [vmem:[#allocation2] sm:$0x1]  ;;  %v425_v49 = vld [vmem:[%s1856_s1 + $0x8] sm:$0xff] }
  0x19   : > { %v602_v52 = vld [vmem:[%s1858_s3] sm:$0xff]  ;;  %v603_v7 = vld [vmem:[%s1858_s3 + $0x8] sm:$0xff]  ;;  %p1441_p12 = pnand %p1440_p11, %p1603_p5 }
  0x1a   : > { %s1134_s12 = sshll.u32 %s400_s18, 3  ;;  %620 = vperm.xlu0 %1433, %v610_v8   ;;  %1268 = vmatprep.mubr.msk.f32.mxu1 %vm658_vm2, %v602_v52  ;;  %v604_v8 = vld [vmem:[%s1858_s3 + $0x10] sm:$0xff]  ;;  %s1445_s18 = scalar_lea.vmem %s1444_s17, 32 }
  0x1b   : > { %s1636_s15 = scalar_lea.vmem %s1855_s0, %s1134_s12  ;;  %625 = vperm.xlu1 %1434, %v611_v14   ;;  %v796_v14 = vld [vmem:[%s1860_s5] sm:$0xff]  ;;  %v798_v52 = vld [vmem:[%s1860_s5 + $0x10] sm:$0xff]  ;;  %s1813_s12 = scalar_lea.hbm %s1866_s11, %s1613_s30 }
  0x1c   : > { %v408_v9 = vld [vmem:[%s1636_s15] sm:$0xff]  ;;  %v409_v10 = vld [vmem:[%s1636_s15 + $0x8] sm:$0xff]  ;;  %v410_v11 = vld [vmem:[%s1636_s15 + $0x10] sm:$0xff]  ;;  %p1442_p13 = pneg %p1441_p12  ;;  %p1447_p1 = scmp.lt.s32.totalorder %s1445_s18, %s1439_s14 }
  0x1d   : > { %v1313_v12 = vpack.c.bf16 %v409_v10, %v408_v9  ;;  %v411_v13 = vld [vmem:[%s1636_s15 + $0x18] sm:$0xff]  ;;  %v412_v18 = vld [vmem:[%s1636_s15 + $0x20] sm:$0xff]  ;;  %v413_v19 = vld [vmem:[%s1636_s15 + $0x28] sm:$0xff] }
  0x1e   : > { %v1319_v15 = vpack.c.bf16 %v411_v13, %v410_v11  ;;  %630 = vperm.xlu0 %1433, %v612_v16   ;;  %v1325_v21 = vpack.c.bf16 %v413_v19, %v412_v18  ;;  %v414_v25 = vld [vmem:[%s1636_s15 + $0x30] sm:$0xff]  ;;  %v415_v26 = vld [vmem:[%s1636_s15 + $0x38] sm:$0xff]  ;;  %v416_v32 = vld [vmem:[%s1636_s15 + $0x40] sm:$0xff]  ;;  %p1448_p2 = por %p1447_p1, %p1446_p0 }
  0x1f   : > { %1315 = vmatprep.subr.msk.bf16.mxu0 %vm1640_vm1, %v1313_v12  ;;  %635 = vperm.xlu1 %1434, %v613_v17   ;;  %v1331_v28 = vpack.c.bf16 %v415_v26, %v414_v25  ;;  %v417_v33 = vld [vmem:[%s1636_s15 + $0x48] sm:$0xff]  ;;  %v418_v39 = vld [vmem:[%s1636_s15 + $0x50] sm:$0xff]  ;;  %v419_v40 = vld [vmem:[%s1636_s15 + $0x58] sm:$0xff] }
  0x20   : > { %1318 = vmatpush3.bf16.xpose.msk.msra.mxu0 %vm1640_vm1, %v1313_v12  ;;  %v1337_v35 = vpack.c.bf16 %v417_v33, %v416_v32  ;;  %v1343_v42 = vpack.c.bf16 %v419_v40, %v418_v39  ;;  %v420_v43 = vld [vmem:[%s1636_s15 + $0x60] sm:$0xff]  ;;  %v421_v44 = vld [vmem:[%s1636_s15 + $0x68] sm:$0xff]  ;;  %v422_v46 = vld [vmem:[%s1636_s15 + $0x70] sm:$0xff]  ;;  %p1449_p3 = pnand %p1448_p2, %p1442_p13 }
  0x21   : > { %1321 = vmatprep.subr.msk.bf16.mxu0 %vm1640_vm1, %v1319_v15  ;;  %v1349_v45 = vpack.c.bf16 %v421_v44, %v420_v43  ;;  %v423_v47 = vld [vmem:[%s1636_s15 + $0x78] sm:$0xff]  ;;  %v606_v10 = vld [vmem:[%s1858_s3 + $0x20] sm:$0xff]  ;;  %v607_v11 = vld [vmem:[%s1858_s3 + $0x28] sm:$0xff] }
  0x22   : > { %640 = vperm.xlu0 %1433, %v614_v20   ;;  %v1355_v48 = vpack.c.bf16 %v423_v47, %v422_v46  ;;  %v605_v9 = vld [vmem:[%s1858_s3 + $0x18] sm:$0xff]  ;;  %v608_v12 = vld [vmem:[%s1858_s3 + $0x30] sm:$0xff] }
  0x23   : > { %645 = vperm.xlu1 %1434, %v615_v22   ;;  %v609_v13 = vld [vmem:[%s1858_s3 + $0x38] sm:$0xff] }
  0x26   : > { %650 = vperm.xlu0 %1433, %v616_v23  }
  0x27   : > { %655 = vperm.xlu1 %1434, %v617_v24  }
  0x28   : > { %1324 = vmatpush3.bf16.xpose.msk.msra.mxu0 %vm1640_vm1, %v1319_v15 }
  0x29   : > { %1327 = vmatprep.subr.msk.bf16.mxu0 %vm1640_vm1, %v1325_v21 }
  0x2a   : > { %806 = vperm.xlu0 %1433, %v800_v27  }
  0x2b   : > { %811 = vperm.xlu1 %1434, %v801_v29  }
  0x2e   : > { %816 = vperm.xlu0 %1433, %v802_v30  }
  0x2f   : > { %821 = vperm.xlu1 %1434, %v803_v31  }
  0x30   : > { %1330 = vmatpush3.bf16.xpose.msk.msra.mxu0 %vm1640_vm1, %v1325_v21 }
  0x31   : > { %1333 = vmatprep.subr.msk.bf16.mxu0 %vm1640_vm1, %v1331_v28 }
  0x32   : > { %932 = vperm.xlu0 %1433, %v928_v34  }
  0x33   : > { %937 = vperm.xlu1 %1434, %v929_v36  }
  0x36   : > { %1027 = vperm.xlu0 %1433, %v1023_v37  }
  0x37   : > { %1032 = vperm.xlu1 %1434, %v1024_v38  }
  0x38   : > { %1336 = vmatpush3.bf16.xpose.msk.msra.mxu0 %vm1640_vm1, %v1331_v28 }
  0x39   : > { %1339 = vmatprep.subr.msk.bf16.mxu0 %vm1640_vm1, %v1337_v35 }
  0x3a   : > { %1047 = vperm.xlu0 %1433, %v1044_v41  }
  0x40   : > { %1342 = vmatpush3.bf16.xpose.msk.msra.mxu0 %vm1640_vm1, %v1337_v35 }
  0x41   : > { %1345 = vmatprep.subr.msk.bf16.mxu0 %vm1640_vm1, %v1343_v42 }
  0x48   : > { %1348 = vmatpush3.bf16.xpose.msk.msra.mxu0 %vm1640_vm1, %v1343_v42 }
  0x49   : > { %1351 = vmatprep.subr.msk.bf16.mxu0 %vm1640_vm1, %v1349_v45 }
  0x50   : > { %1354 = vmatpush3.bf16.xpose.msk.msra.mxu0 %vm1640_vm1, %v1349_v45 }
  0x51   : > { %1357 = vmatprep.subr.msk.bf16.mxu0 %vm1640_vm1, %v1355_v48 }
  0x58   : > { %1360 = vmatpush3.bf16.xpose.msk.msra.mxu0 %vm1640_vm1, %v1355_v48 }
  0x5f   : > { %1255 = vmatmul.mubr.msk.f32.vlgmr.msra.gmra.mrb[0].mxu0 %vm452_vm0, %v425_v49 }
  0x60   : > { %1257 = vmatprep.mubr.msk.f32.mxu0 %vm452_vm0, %v426_v50 }
  0x63   : > { %1258 = vmatmul.mubr.msk.f32.gmra.mrb[2].mxu0 %vm452_vm0, %v427_v51  ;;  %v797_v51 = vld [vmem:[%s1860_s5 + $0x8] sm:$0xff] }
  0x91   : > { %v435_v53 = vpop.permute.xlu0 %434 }
  0x92   : > { %v445_v54 = vpop.permute.xlu1 %444 }
  0x95   : > { %v440_v55 = vpop.permute.xlu0 %439 }
  0x96   : > { %v450_v61 = vpop.permute.xlu1 %449 }
  0x99   : > { %v621_v16 = vpop.permute.xlu0 %620 }
  0x9a   : > { %v626_v15 = vpop.permute.xlu1 %625 }
  0x9d   : > { %v631_v19 = vpop.permute.xlu0 %630 }
  0x9e   : > { %v636_v17 = vpop.permute.xlu1 %635 }
  0xa1   : > { %v641_v31 = vpop.permute.xlu0 %640 }
  0xa2   : > { %v646_v28 = vpop.permute.xlu1 %645 }
  0xa5   : > { %v651_v43 = vpop.permute.xlu0 %650 }
  0xa6   : > { %v656_v40 = vpop.permute.xlu1 %655 }
 0x132   : > { %v1256_v56 = vpop.f32.mrb[0].mxu0 }
 0x133   : > { %v585_v57 = vadd.f32 %v1256_v56, %v440_v55  ;;  %v579_v58 = vpop.f32.mrb[1].mxu0  ;;  %v812_v55 = vpop.permute.xlu1 %811 }
 0x134   : > { %v580_v59 = vadd.f32 %v579_v58, %v435_v53  ;;  %v799_v53 = vld [vmem:[%s1860_s5 + $0x18] sm:$0xff]  ;;  %v807_v56 = vpop.permute.xlu0 %806 }
 0x135   : > { %v599_v60 = vmax.f32 %v585_v57, 0.0 }
 0x136   : > { %v598_v62 = vmax.f32 %v580_v59, 0.0  ;;  %v1259_v63 = vpop.f32.mrb[2].mxu0 }
 0x137   : > { %v595_v0 = vadd.f32 %v1259_v63, %v450_v61  ;;  %v589_v1 = vpop.f32.mrb[3].mxu0 }
 0x138   : > { %v590_v2 = vadd.f32 %v589_v1, %v445_v54  ;;  %v1361_v3 = vpack.c.bf16 %v599_v60, %v598_v62  ;;  %v926_v54 = vld [vmem:[%s1862_s7] sm:$0xff]  ;;  %v822_v62 = vpop.permute.xlu1 %821  ;;  %v817_v1 = vpop.permute.xlu0 %816 }
 0x139   : > { %v601_v4 = vmax.f32 %v595_v0, 0.0 }
 0x13a   : > { %v600_v5 = vmax.f32 %v590_v2, 0.0  ;;  %1362 = vmatprep.subr.bf16.mxu1 %v1361_v3 }
 0x13b   : > { %1364 = vmatpush3.bf16.msra.mxu1 %v1361_v3 }
 0x13c   : > { %v1365_v6 = vpack.c.bf16 %v601_v4, %v600_v5 }
 0x13e   : > { %1366 = vmatprep.subr.bf16.mxu1 %v1365_v6 }
 0x13f   : > { %1368 = vmatpush3.bf16.msra.mxu1 %v1365_v6 }
 0x142   : > { %1269 = vmatmul.mubr.msk.f32.vlgmr.msra.gmra.mrb[0].mxu1 %vm658_vm2, %v603_v7 }
 0x143   : > { %1271 = vmatprep.mubr.msk.f32.mxu1 %vm658_vm2, %v604_v8 }
 0x146   : > { %1272 = vmatmul.mubr.msk.f32.gmra.mrb[2].mxu1 %vm658_vm2, %v605_v9  ;;  %v927_v9 = vld [vmem:[%s1862_s7 + $0x8] sm:$0xff] }
 0x147   : > { %1274 = vmatprep.mubr.msk.f32.mxu1 %vm658_vm2, %v606_v10  ;;  %v938_v10 = vpop.permute.xlu1 %937 }
 0x14a   : > { %1275 = vmatmul.mubr.msk.f32.gmra.mrb[4].mxu1 %vm658_vm2, %v607_v11  ;;  %v933_v11 = vpop.permute.xlu0 %932 }
 0x14b   : > { %1277 = vmatprep.mubr.msk.f32.mxu1 %vm658_vm2, %v608_v12 }
 0x14e   : > { %1278 = vmatmul.mubr.msk.f32.gmra.mrb[6].mxu1 %vm658_vm2, %v609_v13 }
 0x14f   : > { %1296 = vmatprep.mubr.msk.f32.mxu1 %vm824_vm3, %v796_v14 }
 0x215   : > { %v1270_v18 = vpop.f32.mrb[0].mxu1 }
 0x216   : > { %v755_v20 = vadd.f32 %v1270_v18, %v626_v15  ;;  %v749_v21 = vpop.f32.mrb[1].mxu1 }
 0x217   : > { %v750_v22 = vadd.f32 %v749_v21, %v621_v16 }
 0x218   : > { %v789_v23 = vmax.f32 %v755_v20, 0.0 }
 0x219   : > { %v788_v24 = vmax.f32 %v750_v22, 0.0  ;;  %v1273_v25 = vpop.f32.mrb[2].mxu1  ;;  %v1050_v22 = vlaneseq }
 0x21a   : > { %v765_v26 = vadd.f32 %v1273_v25, %v636_v17  ;;  %v759_v27 = vpop.f32.mrb[3].mxu1  ;;  %v1033_v17 = vpop.permute.xlu1 %1032 }
 0x21b   : > { %v1369_v29 = vpack.c.bf16 %v789_v23, %v788_v24  ;;  %v760_v30 = vadd.f32 %v759_v27, %v631_v19  ;;  %v1028_v19 = vpop.permute.xlu0 %1027  ;;  %v1051_v25 = vshrl.u32 %v1050_v22, 7 }
 0x21c   : > { %v791_v32 = vmax.f32 %v765_v26, 0.0 }
 0x21d   : > { %v790_v33 = vmax.f32 %v760_v30, 0.0  ;;  %v1276_v34 = vpop.f32.mrb[4].mxu1  ;;  %1370 = vmatprep.subr.bf16.mxu1 %v1369_v29 }
 0x21e   : > { %v775_v35 = vadd.f32 %v1276_v34, %v646_v28  ;;  %v769_v36 = vpop.f32.mrb[5].mxu1  ;;  %1372 = vmatpush3.bf16.msra.mxu1 %v1369_v29  ;;  %v1052_v28 = vsub.s32 0, %v1051_v25 }
 0x21f   : > { %v1373_v37 = vpack.c.bf16 %v791_v32, %v790_v33  ;;  %v770_v38 = vadd.f32 %v769_v36, %v641_v31  ;;  %v1048_v30 = vpop.permute.xlu0 %1047 }
 0x220   : > { %v793_v39 = vmax.f32 %v775_v35, 0.0  ;;  %v1053_v32 = vrot.slane %v1048_v30, %v1052_v28 }
 0x221   : > { %v792_v41 = vmax.f32 %v770_v38, 0.0  ;;  %v1279_v42 = vpop.f32.mrb[6].mxu1  ;;  %1374 = vmatprep.subr.bf16.mxu1 %v1373_v37 }
 0x222   : > { %v785_v44 = vadd.f32 %v1279_v42, %v656_v40  ;;  %v779_v45 = vpop.f32.mrb[7].mxu1  ;;  %1376 = vmatpush3.bf16.msra.mxu1 %v1373_v37 }
 0x223   : > { %v1377_v46 = vpack.c.bf16 %v793_v39, %v792_v41  ;;  %v780_v47 = vadd.f32 %v779_v45, %v651_v43 }
 0x224   : > { %v795_v48 = vmax.f32 %v785_v44, 0.0 }
 0x225   : > { %v794_v49 = vmax.f32 %v780_v47, 0.0  ;;  %1378 = vmatprep.subr.bf16.mxu1 %v1377_v46 }
 0x226   : > { %1380 = vmatpush3.bf16.msra.mxu1 %v1377_v46 }
 0x227   : > { %v1381_v50 = vpack.c.bf16 %v795_v48, %v794_v49 }
 0x229   : > { %1382 = vmatprep.subr.bf16.mxu1 %v1381_v50 }
 0x22a   : > { %1384 = vmatpush3.bf16.msra.mxu1 %v1381_v50 }
 0x22d   : > { %1297 = vmatmul.mubr.msk.f32.vlgmr.msra.gmra.mrb[8].mxu1 %vm824_vm3, %v797_v51 }
 0x22e   : > { %1299 = vmatprep.mubr.msk.f32.mxu1 %vm824_vm3, %v798_v52 }
 0x231   : > { %1300 = vmatmul.mubr.msk.f32.gmra.mrb[10].mxu1 %vm824_vm3, %v799_v53 }
 0x232   : > { %1310 = vmatprep.mubr.msk.f32.mxu1 %vm658_vm2, %v926_v54 }
 0x300   : > { %v1298_v57 = vpop.f32.mrb[8].mxu1 }
 0x301   : > { %v909_v58 = vadd.f32 %v1298_v57, %v812_v55  ;;  %v903_v59 = vpop.f32.mrb[9].mxu1 }
 0x302   : > { %v904_v60 = vadd.f32 %v903_v59, %v807_v56 }
 0x303   : > { %v923_v61 = vmax.f32 %v909_v58, 0.0 }
 0x304   : > { %v922_v63 = vmax.f32 %v904_v60, 0.0  ;;  %v1301_v0 = vpop.f32.mrb[10].mxu1 }
 0x305   : > { %v919_v2 = vadd.f32 %v1301_v0, %v822_v62  ;;  %v913_v3 = vpop.f32.mrb[11].mxu1 }
 0x306   : > { %v1385_v4 = vpack.c.bf16 %v923_v61, %v922_v63  ;;  %v914_v5 = vadd.f32 %v913_v3, %v817_v1 }
 0x307   : > { %v925_v6 = vmax.f32 %v919_v2, 0.0 }
 0x308   : > { %v924_v7 = vmax.f32 %v914_v5, 0.0  ;;  %1386 = vmatprep.subr.bf16.mxu1 %v1385_v4 }
 0x309   : > { %1388 = vmatpush3.bf16.msra.mxu1 %v1385_v4 }
 0x30a   : > { %v1389_v8 = vpack.c.bf16 %v925_v6, %v924_v7 }
 0x30c   : > { %1390 = vmatprep.subr.bf16.mxu1 %v1389_v8 }
 0x30d   : > { %1392 = vmatpush3.bf16.msra.mxu1 %v1389_v8 }
 0x310   : > { %1311 = vmatmul.mubr.msk.f32.vlgmr.msra.gmra.mrb[12].mxu1 %vm658_vm2, %v927_v9 }
 0x3e3   : > { %v1312_v12 = vpop.f32.mrb[12].mxu1 }
 0x3e4   : > { %v1018_v13 = vadd.f32 %v1312_v12, %v938_v10  ;;  %v1012_v14 = vpop.f32.mrb[13].mxu1 }
 0x3e5   : > { %v1013_v15 = vadd.f32 %v1012_v14, %v933_v11 }
 0x3e6   : > { %v1022_v16 = vmax.f32 %v1018_v13, 0.0 }
 0x3e7   : > { %v1021_v18 = vmax.f32 %v1013_v15, 0.0 }
 0x3e8   : > { %v1036_v20 = vmul.f32 %v1033_v17, %v1022_v16 }
 0x3e9   : > { %v1035_v21 = vmul.f32 %v1028_v19, %v1021_v18 }
 0x3eb   : > { %v1037_v23 = vadd.f32 %v1036_v20, %v1035_v21 }
 0x3ed   : > { %v1038_v24 = vrot.slane %v1037_v23, 4 }
 0x3ef   : > { %v1039_v26 = vadd.f32 %v1038_v24, %v1037_v23 }
 0x3f1   : > { %v1040_v27 = vrot.slane %v1039_v26, 2 }
 0x3f3   : > { %v1041_v29 = vadd.f32 %v1040_v27, %v1039_v26 }
 0x3f5   : > { %v1042_v31 = vrot.slane %v1041_v29, 1 }
 0x3f7   : > { %v1043_v33 = vadd.f32 %v1042_v31, %v1041_v29 }
 0x3f9   : > { %v1054_v34 = vadd.f32 %v1053_v32, %v1043_v33 }
 0x3fb   : > { %v1055_v35 = vsub.f32 0.0, %v1054_v34 }
 0x3fd   : > { %v1056_v36 = vmul.f32 1.442695, %v1055_v35 }
 0x3ff   : > { %1435 = vpow2.f32 %v1056_v36 }
 0x409   : > { %v1436_v37 = vpop.eup %1435 }
 0x40a   : > { %v1058_v38 = vadd.f32 1.0, %v1436_v37 }
 0x40c   : > { %1437 = vrcp.f32 %v1058_v38 }
 0x416   : > { %v1438_v39 = vpop.eup %1437 }
 0x417   : > { %1060 = vst [vmem:[%s393_s23] sm:$0x1] %v1438_v39 }
 0x418   : > { %1452 = shalt.err (!%p1449_p3)
}
 0x419   : > { %s1453_s30 = scalar_lea.hbm %s1813_s12, 16  ;;  %s1457_s15 = scalar_lea.hbm %s1866_s11, 32 }
 0x41a   : > { %p1454_p4 = scmp.ne.s32.totalorder %s1813_s12, %s1453_s30  ;;  %p1458_p9 = scmp.lt.u32.totalorder %s1813_s12, %s1866_s11 }
 0x41b   : > { %p1459_p10 = scmp.lt.u32.totalorder %s1457_s15, %s1453_s30  ;;  %p1461_p12 = scmp.lt.u32.totalorder %s1453_s30, %s1813_s12 }
 0x41c   : > { %p1455_p7 = pnand %p1454_p4, %p1603_p5 }
 0x41d   : > { %p1460_p11 = por %p1459_p10, %p1458_p9 }
 0x41e   : > { %p1456_p8 = pneg %p1455_p7 }
 0x41f   : > { %p1462_p13 = por %p1461_p12, %p1460_p11 }
 0x421   : > { %p1463_p0 = pnand %p1462_p13, %p1456_p8 }
 0x423   : > { %1466 = shalt.err (!%p1463_p0)
}
 0x424   : > { %1393 = dma.vmem_to_hbm [thread:$0]  (%p1603_p5), %s1815_s25, 16, %s1813_s12, %s1062_s13  }
 0x425 PF: > { %p1399_p1 = scmp.ge.s32.totalorder %s1501_s22, 2  ;;  %s1086_s14 = sand.u32 1, %s1489_s19  }
 0x426   : > { %s1087_s17 = scalar_lea.sflag [#allocation4], %s1086_s14 }
 0x427   : > { %p1396_p2 = pnand %p1399_p1, %p1607_p6 }
 0x429   : > { %1484 = dma.done.wait (!%p1396_p2), %s1087_s17, 16  }
 0x42a   : > { %1486 = vsyncadd (!%p1396_p2), %s1087_s17, 4294967280  ;;  %p23_p3 = scmp.ge.s32.totalorder %s1591_s24, 4   ;;  %s1871_s19 = smov %s1493_s20 }
 0x42b   : > { %s1872_s20 = smov %s1497_s21  ;;  %s1873_s21 = smov %s1601_s27 }
 0x42c   : > { %s1874_s22 = smov %s1591_s24  ;;  %25 = sbr.rel (!%p23_p3) target bundleno = 6 (0x6), region = 99 }
 0x433   :  { %1091 = vsyncpa [#allocation4], 1 }
 0x434   :  { %1093 = vsyncpa [#allocation4 + $0x1], 1 }

</bundles_post_ra>
